<compile_context>
chip_gen: v5e
topology: v5e:2x2
jax: 0.10.0
libtpu: 0.0.40
codegen_flags: <defaults>
</compile_context>

<pallas_src>
import jax
import jax.numpy as jnp
from jax.experimental import pallas as pl
from jax.experimental.pallas import tpu as pltpu


def _decoder_kernel(a_ref, z_ref, c_ref, w1_ref, b1_ref, w2_ref, b2_ref,
                    matz_ref, out_ref):
    # a_ref   : (DZ, DZ)  adj_new1 (x) I_Z                (constant block)
    # z_ref   : (DZ, TB)  flattened input_z slab (features x batch, lane-dense)
    # c_ref   : (DZ, 1)   folded Wa correction            (constant block)
    # w1_ref  : (DH, DZ)  I_D (x) W1                      (constant block)
    # b1_ref  : (DH, 1)
    # w2_ref  : (DO, DH)  I_D (x) W2                      (constant block)
    # b2_ref  : (DO, 1)
    # matz_ref: (DZ, TB)  mat_z slab (lane-dense store)
    # out_ref : (DO, TB)  output slab (lane-dense store)
    mz = jnp.dot(a_ref[...], z_ref[...],
                 preferred_element_type=jnp.float32) + c_ref[...]
    matz_ref[...] = mz.astype(matz_ref.dtype)
    h = jnp.dot(w1_ref[...], mz,
                preferred_element_type=jnp.float32) + b1_ref[...]
    h = jnp.maximum(h, 0.0)
    o = jnp.dot(w2_ref[...], h,
                preferred_element_type=jnp.float32) + b2_ref[...]
    out_ref[...] = o.astype(out_ref.dtype)


def mlp_decoder_forward(inputs, input_z, n_in_node, rel_rec, rel_send,
                        origin_A, adj_A_tilt, Wa, params, *, batch_block=2048):
    """JAX/Pallas equivalent of MLPDecoder.forward.

    inputs, n_in_node, rel_rec, rel_send are unused by the reference forward
    (kept for signature parity).
    """
    del inputs, n_in_node, rel_rec, rel_send
    B, D, Z = input_z.shape
    W1 = params["W1"].astype(jnp.float32)        # (H, Z) torch layout
    b1 = params["b1"].astype(jnp.float32)        # (H,)
    W2 = params["W2"].astype(jnp.float32)        # (O, H)
    b2 = params["b2"].astype(jnp.float32)        # (O,)
    H = W1.shape[0]
    O = W2.shape[0]
    DZ, DH, DO = D * Z, D * H, D * O

    # preprocess_adj_new1: inv(I - A^T).
    # TODO(synk): dense matrix inverse has no clean Pallas primitive; computed
    # in plain XLA (tiny D x D) and fed to the kernel as a constant.
    adj_new1 = jnp.linalg.inv(
        jnp.eye(D, dtype=jnp.float32) - origin_A.T.astype(jnp.float32))

    # Kronecker-lift the tiny per-node operators (done once, wrapper-side).
    eye_z = jnp.eye(Z, dtype=jnp.float32)
    eye_d = jnp.eye(D, dtype=jnp.float32)
    a_kron = jnp.kron(adj_new1, eye_z)                     # (DZ, DZ)
    w1_kron = jnp.kron(eye_d, W1)                          # (DH, DZ)
    w2_kron = jnp.kron(eye_d, W2)                          # (DO, DH)
    b1_flat = jnp.tile(b1, D).reshape(DH, 1)
    b2_flat = jnp.tile(b2, D).reshape(DO, 1)

    # Fold Wa: mat_z = A_kron @ z + C, C[i*Z+k] = (rowsum(adj_new1)[i]-1)*Wa[k].
    wa_vec = jnp.broadcast_to(jnp.asarray(Wa, jnp.float32).reshape(-1), (Z,))
    c_flat = ((adj_new1.sum(axis=1) - 1.0)[:, None]
              * wa_vec[None, :]).reshape(DZ, 1)

    # Batch tile: multiple of 128 lanes, clamped by batch_block and by the
    # (rounded-up) batch so small batches don't over-pad.
    b_up = -(-B // 128) * 128
    TB = max(128, (min(batch_block, b_up) // 128) * 128)
    B_pad = -(-B // TB) * TB
    grid = B_pad // TB

    # Single input relayout: (B, D, Z) -> (D*Z, B_pad), features on sublanes,
    # batch on lanes (column b).
    z_flat = input_z.astype(jnp.float32).reshape(B, DZ).T
    if B_pad != B:
        z_flat = jnp.pad(z_flat, ((0, 0), (0, B_pad - B)))

    flops = 2 * (DZ * DZ + DH * DZ + DO * DH) * B_pad
    bytes_accessed = 4 * ((2 * DZ + DO) * B_pad
                          + DZ * DZ + DH * DZ + DO * DH + DZ + DH + DO)
    cost = pl.CostEstimate(flops=flops, transcendentals=0,
                           bytes_accessed=bytes_accessed)

    vmem_limit = 32 * 1024 * 1024  # safe on v5e/v6e (128 MiB) and v7x (64 MiB)

    matz_flat, out_flat = pl.pallas_call(
        _decoder_kernel,
        out_shape=(jax.ShapeDtypeStruct((DZ, B_pad), jnp.float32),
                   jax.ShapeDtypeStruct((DO, B_pad), jnp.float32)),
        grid=(grid,),
        in_specs=[
            pl.BlockSpec((DZ, DZ), lambda j: (0, 0)),      # A_kron  (constant)
            pl.BlockSpec((DZ, TB), lambda j: (0, j)),      # z slab per step
            pl.BlockSpec((DZ, 1), lambda j: (0, 0)),       # C       (constant)
            pl.BlockSpec((DH, DZ), lambda j: (0, 0)),      # W1_kron (constant)
            pl.BlockSpec((DH, 1), lambda j: (0, 0)),       # b1      (constant)
            pl.BlockSpec((DO, DH), lambda j: (0, 0)),      # W2_kron (constant)
            pl.BlockSpec((DO, 1), lambda j: (0, 0)),       # b2      (constant)
        ],
        out_specs=(pl.BlockSpec((DZ, TB), lambda j: (0, j)),
                   pl.BlockSpec((DO, TB), lambda j: (0, j))),
        compiler_params=pltpu.CompilerParams(
            dimension_semantics=("parallel",),
            vmem_limit_bytes=vmem_limit),
        cost_estimate=cost,
    )(a_kron, z_flat, c_flat, w1_kron, b1_flat, w2_kron, b2_flat)

    # Back to PyTorch layout (slice the batch padding off first).
    mat_z = matz_flat[:, :B].T.reshape(B, D, Z)
    out = out_flat[:, :B].T.reshape(B, D, O)
    return mat_z, out, adj_A_tilt


def _xavier_normal(key, fan_out, fan_in):
    # matches torch.nn.init.xavier_normal_ (gain=1), weight shape (out, in)
    std = (2.0 / (fan_in + fan_out)) ** 0.5
    return std * jax.random.normal(key, (fan_out, fan_in), dtype=jnp.float32)


def init_mlp_decoder_params(key, n_in_z, n_hid, n_out):
    k1, k2 = jax.random.split(key)
    return {
        "W1": _xavier_normal(k1, n_hid, n_in_z),   # (n_hid, n_in_z) torch layout
        "b1": jnp.zeros((n_hid,), jnp.float32),
        "W2": _xavier_normal(k2, n_out, n_hid),    # (n_out, n_hid)
        "b2": jnp.zeros((n_out,), jnp.float32),
    }


def _reference_forward(input_z, origin_A, Wa, params):
    # pure-JAX reference mirroring the PyTorch forward, for a sanity check
    D = origin_A.shape[0]
    adj_new1 = jnp.linalg.inv(jnp.eye(D, dtype=jnp.float32) - origin_A.T)
    mat_z = jnp.einsum("ij,bjk->bik", adj_new1, input_z + Wa) - Wa
    h3 = jax.nn.relu(mat_z @ params["W1"].T + params["b1"])
    out = h3 @ params["W2"].T + params["b2"]
    return mat_z, out


if __name__ == "__main__":
    # shapes consistent with the module; batch + batch_block chosen so the
    # fused kernel runs 4 parallel grid steps (>= 2 per TensorCore on v7x).
    batch_size = 512
    data_variable_size = 8   # D (number of graph nodes / variables)
    n_in_z = 4               # Z (latent dim)
    n_hid = 32               # hidden dim
    n_out = 4                # output dim per node (== n_in_z, as in DAG-GNN)

    key = jax.random.PRNGKey(0)
    k_params, k_z, k_a, k_wa, k_in = jax.random.split(key, 5)

    params = init_mlp_decoder_params(k_params, n_in_z, n_hid, n_out)

    input_z = jax.random.normal(
        k_z, (batch_size, data_variable_size, n_in_z), dtype=jnp.float32)
    # small off-diagonal adjacency so (I - A^T) is well conditioned
    origin_A = 0.1 * jax.random.normal(
        k_a, (data_variable_size, data_variable_size), dtype=jnp.float32)
    origin_A = origin_A * (1.0 - jnp.eye(data_variable_size, dtype=jnp.float32))
    adj_A_tilt = jnp.eye(data_variable_size, dtype=jnp.float32)
    Wa = 0.1 * jax.random.normal(k_wa, (n_in_z,), dtype=jnp.float32)
    inputs = jax.random.normal(
        k_in, (batch_size, data_variable_size, n_in_z), dtype=jnp.float32)  # unused

    mat_z, out, adj_tilt_out = mlp_decoder_forward(
        inputs, input_z, n_in_z, None, None, origin_A, adj_A_tilt, Wa, params,
        batch_block=128)
    jax.block_until_ready((mat_z, out, adj_tilt_out))

    # correctness check against pure-JAX reference
    ref_mat_z, ref_out = _reference_forward(input_z, origin_A, Wa, params)
    assert mat_z.shape == ref_mat_z.shape and out.shape == ref_out.shape
    assert jnp.allclose(mat_z, ref_mat_z, atol=5e-4, rtol=5e-4)
    assert jnp.allclose(out, ref_out, atol=5e-4, rtol=5e-4)
    assert jnp.array_equal(adj_tilt_out, adj_A_tilt)

    print("KERNEL_OK")
</pallas_src>

<mosaic_0001>
module attributes {stable_mosaic.version = 11 : i64} {
  func.func @_decoder_kernel(%arg0: i32, %arg1: memref<32x32xf32, #tpu.memory_space<vmem>>, %arg2: memref<32x128xf32, #tpu.memory_space<vmem>>, %arg3: memref<32x1xf32, #tpu.memory_space<vmem>>, %arg4: memref<256x32xf32, #tpu.memory_space<vmem>>, %arg5: memref<256x1xf32, #tpu.memory_space<vmem>>, %arg6: memref<32x256xf32, #tpu.memory_space<vmem>>, %arg7: memref<32x1xf32, #tpu.memory_space<vmem>>, %arg8: memref<32x128xf32, #tpu.memory_space<vmem>>, %arg9: memref<32x128xf32, #tpu.memory_space<vmem>>) attributes {dimension_semantics = [#tpu.dimension_semantics<parallel>], iteration_bounds = array<i64: 4>, scalar_prefetch = 0 : i64, scratch_operands = 0 : i64, tpu.core_type = #tpu.core_type<tc>, window_params = [{pipeline_mode = #tpu.pipeline_mode<synchronous>, transform_indices = @transform_0, window_bounds = array<i64: 32, 32>}, {transform_indices = @transform_1, window_bounds = array<i64: 32, 128>}, {pipeline_mode = #tpu.pipeline_mode<synchronous>, transform_indices = @transform_2, window_bounds = array<i64: 32, 1>}, {pipeline_mode = #tpu.pipeline_mode<synchronous>, transform_indices = @transform_3, window_bounds = array<i64: 256, 32>}, {pipeline_mode = #tpu.pipeline_mode<synchronous>, transform_indices = @transform_4, window_bounds = array<i64: 256, 1>}, {pipeline_mode = #tpu.pipeline_mode<synchronous>, transform_indices = @transform_5, window_bounds = array<i64: 32, 256>}, {pipeline_mode = #tpu.pipeline_mode<synchronous>, transform_indices = @transform_6, window_bounds = array<i64: 32, 1>}, {transform_indices = @transform_7, window_bounds = array<i64: 32, 128>}, {transform_indices = @transform_8, window_bounds = array<i64: 32, 128>}]} {
    %c0 = arith.constant 0 : index
    %c0_0 = arith.constant 0 : index
    %0 = vector.load %arg1[%c0, %c0_0] : memref<32x32xf32, #tpu.memory_space<vmem>>, vector<32x32xf32>
    %c0_1 = arith.constant 0 : index
    %c0_2 = arith.constant 0 : index
    %1 = vector.load %arg2[%c0_1, %c0_2] : memref<32x128xf32, #tpu.memory_space<vmem>>, vector<32x128xf32>
    %cst = arith.constant dense<0.000000e+00> : vector<32x128xf32>
    %2 = tpu.matmul %0, %1, %cst {dimension_numbers = #tpu.dot_dimension_numbers<[1], [0], [0], [1], [0, 0, 1, 1], [], []>} : vector<32x32xf32>, vector<32x128xf32>, vector<32x128xf32> -> vector<32x128xf32>
    %c0_3 = arith.constant 0 : index
    %c0_4 = arith.constant 0 : index
    %3 = vector.load %arg3[%c0_3, %c0_4] : memref<32x1xf32, #tpu.memory_space<vmem>>, vector<32x1xf32>
    %4 = vector.broadcast %3 : vector<32x1xf32> to vector<32x128xf32>
    %5 = arith.addf %2, %4 : vector<32x128xf32>
    %c0_5 = arith.constant 0 : index
    %c0_6 = arith.constant 0 : index
    %6 = vector.load %arg8[%c0_5, %c0_6] : memref<32x128xf32, #tpu.memory_space<vmem>>, vector<32x128xf32>
    tpu.vector_store %arg8[%c0_5, %c0_6], %5 {strides = array<i32>} : memref<32x128xf32, #tpu.memory_space<vmem>>, vector<32x128xf32>,
    %c0_7 = arith.constant 0 : index
    %c0_8 = arith.constant 0 : index
    %7 = vector.load %arg4[%c0_7, %c0_8] : memref<256x32xf32, #tpu.memory_space<vmem>>, vector<256x32xf32>
    %cst_9 = arith.constant dense<0.000000e+00> : vector<256x128xf32>
    %8 = tpu.matmul %7, %5, %cst_9 {dimension_numbers = #tpu.dot_dimension_numbers<[1], [0], [0], [1], [0, 0, 1, 1], [], []>} : vector<256x32xf32>, vector<32x128xf32>, vector<256x128xf32> -> vector<256x128xf32>
    %c0_10 = arith.constant 0 : index
    %c0_11 = arith.constant 0 : index
    %9 = vector.load %arg5[%c0_10, %c0_11] : memref<256x1xf32, #tpu.memory_space<vmem>>, vector<256x1xf32>
    %10 = vector.broadcast %9 : vector<256x1xf32> to vector<256x128xf32>
    %11 = arith.addf %8, %10 : vector<256x128xf32>
    %cst_12 = arith.constant 0.000000e+00 : f32
    %12 = vector.broadcast %cst_12 : f32 to vector<256x128xf32>
    %13 = arith.maximumf %11, %12 : vector<256x128xf32>
    %c0_13 = arith.constant 0 : index
    %c0_14 = arith.constant 0 : index
    %14 = vector.load %arg6[%c0_13, %c0_14] : memref<32x256xf32, #tpu.memory_space<vmem>>, vector<32x256xf32>
    %cst_15 = arith.constant dense<0.000000e+00> : vector<32x128xf32>
    %15 = tpu.matmul %14, %13, %cst_15 {dimension_numbers = #tpu.dot_dimension_numbers<[1], [0], [0], [1], [0, 0, 1, 1], [], []>} : vector<32x256xf32>, vector<256x128xf32>, vector<32x128xf32> -> vector<32x128xf32>
    %c0_16 = arith.constant 0 : index
    %c0_17 = arith.constant 0 : index
    %16 = vector.load %arg7[%c0_16, %c0_17] : memref<32x1xf32, #tpu.memory_space<vmem>>, vector<32x1xf32>
    %17 = vector.broadcast %16 : vector<32x1xf32> to vector<32x128xf32>
    %18 = arith.addf %15, %17 : vector<32x128xf32>
    %c0_18 = arith.constant 0 : index
    %c0_19 = arith.constant 0 : index
    %19 = vector.load %arg9[%c0_18, %c0_19] : memref<32x128xf32, #tpu.memory_space<vmem>>, vector<32x128xf32>
    tpu.vector_store %arg9[%c0_18, %c0_19], %18 {strides = array<i32>} : memref<32x128xf32, #tpu.memory_space<vmem>>, vector<32x128xf32>,
    return
  }
  func.func @transform_0(%arg0: i32) -> (i32, i32) {
    %c0_i32 = arith.constant 0 : i32
    %c0_i32_0 = arith.constant 0 : i32
    %c0_i32_1 = arith.constant 0 : i32
    return %c0_i32, %c0_i32_0 : i32, i32
  }
  func.func @transform_1(%arg0: i32) -> (i32, i32) {
    %c0_i32 = arith.constant 0 : i32
    %c0_i32_0 = arith.constant 0 : i32
    return %c0_i32, %arg0 : i32, i32
  }
  func.func @transform_2(%arg0: i32) -> (i32, i32) {
    %c0_i32 = arith.constant 0 : i32
    %c0_i32_0 = arith.constant 0 : i32
    %c0_i32_1 = arith.constant 0 : i32
    return %c0_i32, %c0_i32_0 : i32, i32
  }
  func.func @transform_3(%arg0: i32) -> (i32, i32) {
    %c0_i32 = arith.constant 0 : i32
    %c0_i32_0 = arith.constant 0 : i32
    %c0_i32_1 = arith.constant 0 : i32
    return %c0_i32, %c0_i32_0 : i32, i32
  }
  func.func @transform_4(%arg0: i32) -> (i32, i32) {
    %c0_i32 = arith.constant 0 : i32
    %c0_i32_0 = arith.constant 0 : i32
    %c0_i32_1 = arith.constant 0 : i32
    return %c0_i32, %c0_i32_0 : i32, i32
  }
  func.func @transform_5(%arg0: i32) -> (i32, i32) {
    %c0_i32 = arith.constant 0 : i32
    %c0_i32_0 = arith.constant 0 : i32
    %c0_i32_1 = arith.constant 0 : i32
    return %c0_i32, %c0_i32_0 : i32, i32
  }
  func.func @transform_6(%arg0: i32) -> (i32, i32) {
    %c0_i32 = arith.constant 0 : i32
    %c0_i32_0 = arith.constant 0 : i32
    %c0_i32_1 = arith.constant 0 : i32
    return %c0_i32, %c0_i32_0 : i32, i32
  }
  func.func @transform_7(%arg0: i32) -> (i32, i32) {
    %c0_i32 = arith.constant 0 : i32
    %c0_i32_0 = arith.constant 0 : i32
    return %c0_i32, %arg0 : i32, i32
  }
  func.func @transform_8(%arg0: i32) -> (i32, i32) {
    %c0_i32 = arith.constant 0 : i32
    %c0_i32_0 = arith.constant 0 : i32
    return %c0_i32, %arg0 : i32, i32
  }
}

</mosaic_0001>

<bundles_post_ra>
// kernel: tpu_custom_call.1
= control target key start
LH: loop header
LB: loop body
LE: loop exit
PB: predicated region body
PF: predicated region fallthrough
CT: control target
= control target key end

     0   :  { %s1849_s0 = inlined_call_operand.vmem [shape: f32[32,32], index: 0, kind: input, shape index: {}]   ;;  %s1850_s1 = inlined_call_operand.vmem [shape: f32[32,512], index: 1, kind: input, shape index: {}]   ;;  %s1851_s2 = inlined_call_operand.vmem [shape: f32[32,1], index: 2, kind: input, shape index: {}]   ;;  %s1852_s3 = inlined_call_operand.vmem [shape: f32[256,32], index: 3, kind: input, shape index: {}]   ;;  %s1853_s4 = inlined_call_operand.vmem [shape: f32[256,1], index: 4, kind: input, shape index: {}]   ;;  %s1854_s5 = inlined_call_operand.vmem [shape: f32[32,256], index: 5, kind: input, shape index: {}]   ;;  %s1855_s6 = inlined_call_operand.vmem [shape: f32[32,1], index: 6, kind: input, shape index: {}]   ;;  %s1856_s7 = inlined_call_operand.hbm [shape: f32[32,512], index: 7, kind: output, shape index: {0}]   ;;  %s1857_s8 = inlined_call_operand.hbm [shape: f32[32,512], index: 8, kind: output, shape index: {1}]  }
   0x1   :  { %1858 = sst [smem:[#allocation9_spill]] %s1849_s0 }
   0x2   :  { %1859 = sst [smem:[#allocation10_spill]] %s1850_s1 }
   0x3   :  { %14 = vsyncpa [#allocation4], 0 }
   0x4   :  { %16 = vsyncpa [#allocation4 + $0x1], 0 }
   0x5   :  { %17 = vsyncpa [#allocation6], 0 }
   0x6   :  { %19 = vsyncpa [#allocation6 + $0x1], 0  ;;  %s1395_s27 = smov 0   ;;  %s1397_s28 = smov 0  }
   0x7   :  { %s1399_s29 = smov 0   ;;  %s1401_s30 = smov 0  }
   0x8 LB: > { %s1135_s9 = sadd.s32 4294967295, %s1344_s30   ;;  %s1136_s10 = sadd.s32 4294967294, %s1344_s30   ;;  %s1344_s30 = sphi %s1401_s30, %s1867_s30   ;;  %s1340_s29 = sphi %s1399_s29, %s1866_s29   ;;  %s1336_s28 = sphi %s1397_s28, %s1865_s28   ;;  %s1332_s27 = sphi %s1395_s27, %s1864_s27  }
   0x9   : > { %s1418_s11 = sadd.s32 1, %s1344_s30   ;;  %s53_s12 = sadd.s32 1, %s1340_s29 }
   0xa   : > { %s50_s13 = ssub.s32 %s1344_s30, %s1418_s11  ;;  %p60_p0 = scmp.ne.s32.totalorder %s1340_s29, %s1336_s28 }
   0xb   : > { %p51_p1 = scmp.eq.s32.totalorder %s50_s13, 0  ;;  %p61_p2 = scmp.eq.s32.totalorder %s1344_s30, 0 }
   0xc   : > { %p195_p3 = scmp.eq.s32.totalorder %s1135_s9, 3  ;;  %p200_p4 = scmp.ne.s32.totalorder %s1336_s28, %s1332_s27 }
   0xd   : > { %s1431_s14 = scalar_select %p51_p1, %s1340_s29, %s53_s12  }
   0xe   : > { %p62_p5 = por %p61_p2, %p60_p0  ;;  %p1433_p6 = por %p195_p3, %p60_p0 }
   0xf   : > { %p201_p7 = scmp.eq.s32.totalorder %s1136_s10, 3  ;;  %p1138_p9 = scmp.ge.s32.totalorder %s1344_s30, 4 }
  0x11   : > { %p1437_p8 = por %p201_p7, %p200_p4  ;;  %261 = sbr.rel (%p1138_p9) target bundleno = 36 (0x24), region = 40 }
  0x16   : > { %264 = sbr.rel (!%p62_p5) target bundleno = 36 (0x24), region = 44  ;;  %s266_s17 = sand.u32 (%p62_p5), 1, %s1340_s29  }
  0x17   : > { %s1140_s18 = sshll.u32 (%p62_p5), %s1344_s30, 3  ;;  %s1139_s19 = sshll.u32 (%p62_p5), %s266_s17, 5 }
  0x18   : > { %s1862_s1 = sld [smem:[#allocation10_spill]] (%p62_p5)  ;;  %s268_s23 = scalar_lea.vmem (%p62_p5), [#allocation2], %s1139_s19 }
  0x1e   : > { %s270_s22 = scalar_lea.vmem %s1862_s1, %s1140_s18 }
  0x1f   : > { %v305_v0 = vld [vmem:[%s270_s22] sm:$0xff] }
  0x20   : > { %v307_v1 = vld [vmem:[%s270_s22 + $0x20] sm:$0xff]  ;;  %306 = vst [vmem:[%s268_s23] sm:$0xff] %v305_v0 }
  0x21   : > { %v309_v2 = vld [vmem:[%s270_s22 + $0x40] sm:$0xff]  ;;  %308 = vst [vmem:[%s268_s23 + $0x8] sm:$0xff] %v307_v1 }
  0x22   : > { %v311_v3 = vld [vmem:[%s270_s22 + $0x60] sm:$0xff]  ;;  %310 = vst [vmem:[%s268_s23 + $0x10] sm:$0xff] %v309_v2 }
  0x23   : > { %312 = vst [vmem:[%s268_s23 + $0x18] sm:$0xff] %v311_v3 }
  0x24 PF: > { %p1141_p10 = scmp.ge.s32.totalorder %s1344_s30, 1  ;;  %p317_p11 = scmp.lt.s32.totalorder %s1344_s30, 5 }
  0x26   : > { %p318_p12 = pnand %p1141_p10, %p317_p11 }
  0x27   : > { %s1456_s12 = sand.u32 (!%p318_p12), 1, %s1336_s28   ;;  %s1863_s0 = sld [smem:[#allocation9_spill]] (!%p318_p12) }
  0x28   : > { %321 = sbr.rel (%p318_p12) target bundleno = 612 (0x264), region = 82  ;;  %s1459_s13 = sshll.u32 (!%p318_p12), %s1456_s12, 5 }
  0x29   : > { %s326_s17 = scalar_lea.vmem (!%p318_p12), [#allocation2], %s1459_s13  ;;  %s1572_s22 = scalar_lea.vmem (!%p318_p12), [#allocation3], %s1459_s13 }
  0x2a   : > { %s1016_s10 = sshll.u32 (!%p318_p12), %s1572_s22, 4  ;;  %s1793_s18 = sshll.u32 (!%p318_p12), %s1135_s9, 3  ;;  %s1017_s10 = int_to_ptr.vmem [resolvable:$true] %s1016_s10 }
  0x2b   : > { %s1015_s20 = scalar_lea.hbm (!%p318_p12), %s1856_s7, %s1793_s18  ;;  %s1000_s23 = scalar_lea.sflag (!%p318_p12), [#allocation4], %s1456_s12 }
  0x2c   : > { %s1018_s21 = sshll.u32 (!%p318_p12), %s1015_s20, 4  ;;  %s1270_s9 = scalar_lea.hbm (!%p318_p12), %s1856_s7, 128  ;;  %s1019_s21 = int_to_ptr.hbm [resolvable:$true] %s1018_s21 }
  0x2d   : > { %v373_v4 = vld [vmem:[%s1851_s2 + $0x18] sm:$0xff]  ;;  %v371_v5 = vld [vmem:[%s1851_s2 + $0x8] sm:$0xff]  ;;  %v1346_v6 = vmov 0   ;;  %v368_v8 = vld [vmem:[%s326_s17 + $0x10] sm:$0xff]  ;;  %vm394_vm0 = vcmask 261120   ;;  %s1264_s24 = sshra.s32 %s1019_s21, 4  ;;  %s1265_s24 = int_to_ptr.hbm [resolvable:$true] %s1264_s24 }
  0x2e   : > { %1248 = vset.pattern.permute.xlu1 %v1346_v6  ;;  %1247 = vset.pattern.permute.xlu0 %v1346_v6  ;;  %v369_v7 = vld [vmem:[%s326_s17 + $0x18] sm:$0xff]  ;;  %v367_v9 = vld [vmem:[%s326_s17 + $0x8] sm:$0xff]  ;;  %v372_v10 = vld [vmem:[%s1851_s2 + $0x10] sm:$0xff]  ;;  %p1271_p2 = scmp.lt.s32.totalorder %s1265_s24, %s1856_s7 }
  0x2f   : > { %391 = vperm.xlu0 %1247, %v373_v4   ;;  %381 = vperm.xlu1 %1248, %v371_v5   ;;  %v370_v11 = vld [vmem:[%s1851_s2] sm:$0xff]  ;;  %v503_v14 = vld [vmem:[%s1853_s4 + $0xf8] sm:$0xff]  ;;  %v485_v15 = vld [vmem:[%s1853_s4 + $0x68] sm:$0xff] }
  0x30   : > { %1249 = vset.pattern.permute.xlu2 %v1346_v6  ;;  %419 = vmatpush.msra.mxu0 %v369_v7  ;;  %v366_v12 = vld [vmem:[%s326_s17] sm:$0xff]  ;;  %v363_v16 = vld [vmem:[%s1863_s0 + $0x8] sm:$0xff]  ;;  %v364_v19 = vld [vmem:[%s1863_s0 + $0x10] sm:$0xff] }
  0x31   : > { %v362_v13 = vld [vmem:[%s1863_s0] sm:$0xff]  ;;  %v501_v18 = vld [vmem:[%s1853_s4 + $0xe8] sm:$0xff]  ;;  %v482_v21 = vld [vmem:[%s1853_s4 + $0x50] sm:$0xff] }
  0x32   : > { %420 = vmatpush.msra.mxu0 %v368_v8  ;;  %v484_v17 = vld [vmem:[%s1853_s4 + $0x60] sm:$0xff]  ;;  %v365_v22 = vld [vmem:[%s1863_s0 + $0x18] sm:$0xff]  ;;  %v481_v23 = vld [vmem:[%s1853_s4 + $0x48] sm:$0xff]  ;;  %s1266_s0 = scalar_lea.hbm %s1265_s24, 32 }
  0x33   : > { %v500_v20 = vld [vmem:[%s1853_s4 + $0xe0] sm:$0xff]  ;;  %v498_v24 = vld [vmem:[%s1853_s4 + $0xd0] sm:$0xff]  ;;  %v497_v25 = vld [vmem:[%s1853_s4 + $0xc8] sm:$0xff]  ;;  %p1267_p13 = scmp.ne.s32.totalorder %s1265_s24, %s1266_s0  ;;  %p1272_p3 = scmp.lt.s32.totalorder %s1270_s9, %s1266_s0 }
  0x34   : > { %421 = vmatpush.msra.mxu0 %v367_v9  ;;  %v479_v26 = vld [vmem:[%s1853_s4 + $0x38] sm:$0xff]  ;;  %v478_v27 = vld [vmem:[%s1853_s4 + $0x30] sm:$0xff]  ;;  %v476_v30 = vld [vmem:[%s1853_s4 + $0x20] sm:$0xff] }
  0x35   : > { %v495_v28 = vld [vmem:[%s1853_s4 + $0xb8] sm:$0xff]  ;;  %v494_v29 = vld [vmem:[%s1853_s4 + $0xb0] sm:$0xff]  ;;  %v492_v32 = vld [vmem:[%s1853_s4 + $0xa0] sm:$0xff]  ;;  %p1268_p0 = pnand %p1267_p13, %p1433_p6  ;;  %p1273_p4 = por %p1272_p3, %p1271_p2 }
  0x36   : > { %422 = vmatpush.msra.mxu0 %v366_v12  ;;  %v475_v31 = vld [vmem:[%s1853_s4 + $0x18] sm:$0xff]  ;;  %v473_v34 = vld [vmem:[%s1853_s4 + $0x8] sm:$0xff]  ;;  %v472_v35 = vld [vmem:[%s1853_s4] sm:$0xff] }
  0x37   : > { %386 = vperm.xlu0 %1247, %v372_v10   ;;  %376 = vperm.xlu1 %1248, %v370_v11   ;;  %v491_v33 = vld [vmem:[%s1853_s4 + $0x98] sm:$0xff]  ;;  %v489_v36 = vld [vmem:[%s1853_s4 + $0x88] sm:$0xff]  ;;  %v913_v38 = vld [vmem:[%s1855_s6] sm:$0xff]  ;;  %p1269_p1 = pneg %p1268_p0 }
  0x38   : > { %1145 = vmatmul.msk.f32.vlgmr.msra.gmra.mxu0 %vm394_vm0, %v362_v13  ;;  %v487_v37 = vld [vmem:[%s1853_s4 + $0x78] sm:$0xff]  ;;  %v914_v39 = vld [vmem:[%s1855_s6 + $0x8] sm:$0xff]  ;;  %v486_v40 = vld [vmem:[%s1853_s4 + $0x70] sm:$0xff] }
  0x39   : > { %581 = vperm.xlu2 %1249, %v487_v37   ;;  %v916_v41 = vld [vmem:[%s1855_s6 + $0x18] sm:$0xff]  ;;  %v502_v42 = vld [vmem:[%s1853_s4 + $0xf0] sm:$0xff]  ;;  %v480_v46 = vld [vmem:[%s1853_s4 + $0x40] sm:$0xff]  ;;  %p1274_p5 = pnand %p1273_p4, %p1269_p1 }
  0x3a   : > { %v483_v43 = vld [vmem:[%s1853_s4 + $0x58] sm:$0xff]  ;;  %v496_v51 = vld [vmem:[%s1853_s4 + $0xc0] sm:$0xff]  ;;  %v477_v54 = vld [vmem:[%s1853_s4 + $0x28] sm:$0xff] }
  0x3b   : > { %v499_v44 = vld [vmem:[%s1853_s4 + $0xd8] sm:$0xff]  ;;  %v493_v58 = vld [vmem:[%s1853_s4 + $0xa8] sm:$0xff]  ;;  %v440_v61 = vld [vmem:[%s1852_s3] sm:$0xff] }
  0x3c   : > { %v448_v62 = vld [vmem:[%s1852_s3 + $0x40] sm:$0xff]  ;;  %v461_v63 = vld [vmem:[%s1852_s3 + $0xa8] sm:$0xff]  ;;  %v474_v1 = vld [vmem:[%s1853_s4 + $0x10] sm:$0xff] }
  0x3d   : > { %v465_v0 = vld [vmem:[%s1852_s3 + $0xc8] sm:$0xff]  ;;  %v462_v4 = vld [vmem:[%s1852_s3 + $0xb0] sm:$0xff]  ;;  %v463_v9 = vld [vmem:[%s1852_s3 + $0xb8] sm:$0xff] }
  0x3e   : > { %v441_v2 = vld [vmem:[%s1852_s3 + $0x8] sm:$0xff]  ;;  %v466_v5 = vld [vmem:[%s1852_s3 + $0xd0] sm:$0xff]  ;;  %v467_v10 = vld [vmem:[%s1852_s3 + $0xd8] sm:$0xff] }
  0x3f   : > { %661 = vperm.xlu0 %1247, %v503_v14   ;;  %571 = vperm.xlu1 %1248, %v485_v15   ;;  %v449_v3 = vld [vmem:[%s1852_s3 + $0x48] sm:$0xff]  ;;  %v490_v6 = vld [vmem:[%s1853_s4 + $0x90] sm:$0xff]  ;;  %v488_v11 = vld [vmem:[%s1853_s4 + $0x80] sm:$0xff] }
  0x40   : > { %1146 = vmatmul.msk.f32.gmra.mxu0 %vm394_vm0, %v363_v16  ;;  %v442_v7 = vld [vmem:[%s1852_s3 + $0x10] sm:$0xff]  ;;  %v443_v12 = vld [vmem:[%s1852_s3 + $0x18] sm:$0xff]  ;;  %v464_v14 = vld [vmem:[%s1852_s3 + $0xc0] sm:$0xff] }
  0x41   : > { %576 = vperm.xlu2 %1249, %v486_v40   ;;  %v450_v8 = vld [vmem:[%s1852_s3 + $0x50] sm:$0xff]  ;;  %v451_v13 = vld [vmem:[%s1852_s3 + $0x58] sm:$0xff]  ;;  %v468_v15 = vld [vmem:[%s1852_s3 + $0xe0] sm:$0xff] }
  0x42   : > { %v915_v16 = vld [vmem:[%s1855_s6 + $0x10] sm:$0xff] }
  0x47   : > { %566 = vperm.xlu0 %1247, %v484_v17   ;;  %651 = vperm.xlu1 %1248, %v501_v18   ;;  %v444_v17 = vld [vmem:[%s1852_s3 + $0x20] sm:$0xff] }
  0x48   : > { %1147 = vmatmul.msk.f32.gmra.mxu0 %vm394_vm0, %v364_v19  ;;  %v452_v18 = vld [vmem:[%s1852_s3 + $0x60] sm:$0xff]  ;;  %v469_v19 = vld [vmem:[%s1852_s3 + $0xe8] sm:$0xff] }
  0x49   : > { %656 = vperm.xlu2 %1249, %v502_v42  }
  0x4f   : > { %646 = vperm.xlu0 %1247, %v500_v20   ;;  %556 = vperm.xlu1 %1248, %v482_v21   ;;  %v445_v20 = vld [vmem:[%s1852_s3 + $0x28] sm:$0xff] }
  0x50   : > { %1148 = vmatmul.msk.f32.gmra.mxu0 %vm394_vm0, %v365_v22  ;;  %v453_v21 = vld [vmem:[%s1852_s3 + $0x68] sm:$0xff]  ;;  %v470_v22 = vld [vmem:[%s1852_s3 + $0xf0] sm:$0xff] }
  0x51   : > { %561 = vperm.xlu2 %1249, %v483_v43  }
  0x57   : > { %551 = vperm.xlu0 %1247, %v481_v23   ;;  %636 = vperm.xlu1 %1248, %v498_v24   ;;  %v446_v23 = vld [vmem:[%s1852_s3 + $0x30] sm:$0xff] }
  0x58   : > { %v454_v24 = vld [vmem:[%s1852_s3 + $0x70] sm:$0xff] }
  0x59   : > { %641 = vperm.xlu2 %1249, %v499_v44  }
  0x5f   : > { %631 = vperm.xlu0 %1247, %v497_v25   ;;  %541 = vperm.xlu1 %1248, %v479_v26   ;;  %v471_v25 = vld [vmem:[%s1852_s3 + $0xf8] sm:$0xff] }
  0x60   : > { %v447_v26 = vld [vmem:[%s1852_s3 + $0x38] sm:$0xff] }
  0x61   : > { %546 = vperm.xlu2 %1249, %v480_v46  }
  0x67   : > { %536 = vperm.xlu0 %1247, %v478_v27   ;;  %621 = vperm.xlu1 %1248, %v495_v28   ;;  %v455_v27 = vld [vmem:[%s1852_s3 + $0x78] sm:$0xff]  ;;  %v456_v28 = vld [vmem:[%s1852_s3 + $0x80] sm:$0xff] }
  0x69   : > { %626 = vperm.xlu2 %1249, %v496_v51  }
  0x6f   : > { %616 = vperm.xlu0 %1247, %v494_v29   ;;  %526 = vperm.xlu1 %1248, %v476_v30   ;;  %v457_v29 = vld [vmem:[%s1852_s3 + $0x88] sm:$0xff]  ;;  %v458_v30 = vld [vmem:[%s1852_s3 + $0x90] sm:$0xff] }
  0x71   : > { %531 = vperm.xlu2 %1249, %v477_v54  }
  0x77   : > { %521 = vperm.xlu0 %1247, %v475_v31   ;;  %606 = vperm.xlu1 %1248, %v492_v32   ;;  %v459_v31 = vld [vmem:[%s1852_s3 + $0x98] sm:$0xff]  ;;  %v460_v32 = vld [vmem:[%s1852_s3 + $0xa0] sm:$0xff] }
  0x79   : > { %611 = vperm.xlu2 %1249, %v493_v58  }
  0x7f   : > { %601 = vperm.xlu0 %1247, %v491_v33   ;;  %511 = vperm.xlu1 %1248, %v473_v34  }
  0x81   : > { %516 = vperm.xlu2 %1249, %v474_v1  }
  0x87   : > { %506 = vperm.xlu0 %1247, %v472_v35   ;;  %591 = vperm.xlu1 %1248, %v489_v36  }
  0x89   : > { %596 = vperm.xlu2 %1249, %v490_v6  }
  0x8f   : > { %919 = vperm.xlu0 %1247, %v913_v38   ;;  %924 = vperm.xlu1 %1248, %v914_v39  }
  0x91   : > { %586 = vperm.xlu2 %1249, %v488_v11  }
  0x93   : > { %v582_v33 = vpop.permute.xlu2 %581 }
  0x97   : > { %934 = vperm.xlu0 %1247, %v916_v41  }
  0x99   : > { %929 = vperm.xlu2 %1249, %v915_v16  }
  0x9b   : > { %v577_v35 = vpop.permute.xlu2 %576 }
  0xa1   : > { %v382_v45 = vpop.permute.xlu1 %381  ;;  %v392_v50 = vpop.permute.xlu0 %391 }
  0xa3   : > { %v657_v43 = vpop.permute.xlu2 %656 }
  0xa9   : > { %v377_v47 = vpop.permute.xlu1 %376  ;;  %v387_v55 = vpop.permute.xlu0 %386 }
  0xb1   : > { %v662_v34 = vpop.permute.xlu0 %661  ;;  %v572_v38 = vpop.permute.xlu1 %571 }
  0xb5   : > { %v424_v48 = vpop.f32.mrf.mxu0 }
  0xb6   : > { %v425_v49 = vadd.f32 %v424_v48, %v377_v47 }
  0xb8   : > { %436 = vst [vmem:[%s1572_s22] sm:$0xff] %v425_v49 }
  0xb9   : > { %v567_v39 = vpop.permute.xlu0 %566  ;;  %v652_v44 = vpop.permute.xlu1 %651 }
  0xbd   : > { %v427_v52 = vpop.f32.mrf.mxu0 }
  0xbe   : > { %v428_v53 = vadd.f32 %v427_v52, %v382_v45 }
  0xc0   : > { %437 = vst [vmem:[%s1572_s22 + $0x8] sm:$0xff] %v428_v53 }
  0xc1   : > { %v647_v45 = vpop.permute.xlu0 %646 }
  0xc5   : > { %v430_v56 = vpop.f32.mrf.mxu0 }
  0xc6   : > { %v431_v57 = vadd.f32 %v430_v56, %v387_v55 }
  0xc8   : > { %438 = vst [vmem:[%s1572_s22 + $0x10] sm:$0xff] %v431_v57 }
  0xc9   : > { %v552_v52 = vpop.permute.xlu0 %551 }
  0xcd   : > { %v433_v59 = vpop.f32.mrf.mxu0 }
  0xce   : > { %v434_v60 = vadd.f32 %v433_v59, %v392_v50  ;;  %v557_v50 = vpop.permute.xlu1 %556 }
  0xd0   : > { %439 = vst [vmem:[%s1572_s22 + $0x18] sm:$0xff] %v434_v60  ;;  %772 = vmatpush.msrb.mxu0 %v434_v60  ;;  %1187 = vmatpush.msra.mxu1 %v434_v60 }
  0xd1   : > { %1188 = vmatpush.msra.mxu2 %v434_v60  ;;  %1189 = vmatpush.msra.mxu3 %v434_v60  ;;  %v632_v59 = vpop.permute.xlu0 %631 }
  0xd2   : > { %773 = vmatpush.msrb.mxu0 %v431_v57  ;;  %1190 = vmatpush.msra.mxu1 %v431_v57 }
  0xd3   : > { %1191 = vmatpush.msra.mxu2 %v431_v57  ;;  %1192 = vmatpush.msra.mxu3 %v431_v57 }
  0xd4   : > { %774 = vmatpush.msrb.mxu0 %v428_v53  ;;  %1193 = vmatpush.msra.mxu1 %v428_v53 }
  0xd5   : > { %1194 = vmatpush.msra.mxu2 %v428_v53  ;;  %1195 = vmatpush.msra.mxu3 %v428_v53 }
  0xd6   : > { %775 = vmatpush.msrb.mxu0 %v425_v49  ;;  %1196 = vmatpush.msra.mxu1 %v425_v49  ;;  %v637_v57 = vpop.permute.xlu1 %636 }
  0xd7   : > { %1197 = vmatpush.msra.mxu2 %v425_v49  ;;  %1198 = vmatpush.msra.mxu3 %v425_v49  ;;  %v562_v49 = vpop.permute.xlu2 %561 }
  0xd8   : > { %1149 = vmatmul.msk.f32.vlgmr.msrb.gmra.mxu0 %vm394_vm0, %v440_v61  ;;  %1157 = vmatmul.msk.f32.vlgmr.msra.gmra.mxu1 %vm394_vm0, %v448_v62 }
  0xd9   : > { %1170 = vmatmul.msk.f32.vlgmr.msra.gmra.mxu2 %vm394_vm0, %v461_v63  ;;  %1174 = vmatmul.msk.f32.vlgmr.msra.gmra.mxu3 %vm394_vm0, %v465_v0 }
  0xde   : > { %v542_v1 = vpop.permute.xlu1 %541 }
  0xdf   : > { %v642_v55 = vpop.permute.xlu2 %641 }
  0xe0   : > { %1150 = vmatmul.msk.f32.gmra.mxu0 %vm394_vm0, %v441_v2  ;;  %1158 = vmatmul.msk.f32.gmra.mxu1 %vm394_vm0, %v449_v3  ;;  %v1745_v2 = vpop.permute.xlu0 %536 }
  0xe1   : > { %1171 = vmatmul.msk.f32.gmra.mxu2 %vm394_vm0, %v462_v4  ;;  %1175 = vmatmul.msk.f32.gmra.mxu3 %vm394_vm0, %v466_v5 }
  0xe7   : > { %v547_v63 = vpop.permute.xlu2 %546 }
  0xe8   : > { %1151 = vmatmul.msk.f32.gmra.mxu0 %vm394_vm0, %v442_v7  ;;  %1159 = vmatmul.msk.f32.gmra.mxu1 %vm394_vm0, %v450_v8  ;;  %v622_v8 = vpop.permute.xlu1 %621 }
  0xe9   : > { %1172 = vmatmul.msk.f32.gmra.mxu2 %vm394_vm0, %v463_v9  ;;  %1176 = vmatmul.msk.f32.gmra.mxu3 %vm394_vm0, %v467_v10  ;;  %v617_v9 = vpop.permute.xlu0 %616 }
  0xef   : > { %v627_v7 = vpop.permute.xlu2 %626 }
  0xf0   : > { %1152 = vmatmul.msk.f32.gmra.mxu0 %vm394_vm0, %v443_v12  ;;  %1160 = vmatmul.msk.f32.gmra.mxu1 %vm394_vm0, %v451_v13 }
  0xf1   : > { %1173 = vmatmul.msk.f32.gmra.mxu2 %vm394_vm0, %v464_v14  ;;  %1177 = vmatmul.msk.f32.gmra.mxu3 %vm394_vm0, %v468_v15 }
  0xf8   : > { %1153 = vmatmul.msk.f32.gmra.mxu0 %vm394_vm0, %v444_v17  ;;  %1161 = vmatmul.msk.f32.gmra.mxu1 %vm394_vm0, %v452_v18 }
  0xf9   : > { %1178 = vmatmul.msk.f32.gmra.mxu3 %vm394_vm0, %v469_v19 }
 0x100   : > { %1154 = vmatmul.msk.f32.gmra.mxu0 %vm394_vm0, %v445_v20  ;;  %1162 = vmatmul.msk.f32.gmra.mxu1 %vm394_vm0, %v453_v21 }
 0x101   : > { %1179 = vmatmul.msk.f32.gmra.mxu3 %vm394_vm0, %v470_v22  ;;  %v532_v22 = vpop.permute.xlu2 %531 }
 0x108   : > { %1155 = vmatmul.msk.f32.gmra.mxu0 %vm394_vm0, %v446_v23  ;;  %1163 = vmatmul.msk.f32.gmra.mxu1 %vm394_vm0, %v454_v24 }
 0x109   : > { %1180 = vmatmul.msk.f32.gmra.mxu3 %vm394_vm0, %v471_v25 }
 0x110   : > { %1156 = vmatmul.msk.f32.gmra.mxu0 %vm394_vm0, %v447_v26  ;;  %1164 = vmatmul.msk.f32.gmra.mxu1 %vm394_vm0, %v455_v27  ;;  %v527_v27 = vpop.permute.xlu1 %526 }
 0x118   : > { %1165 = vmatmul.msk.f32.gmra.mxu1 %vm394_vm0, %v456_v28 }
 0x120   : > { %1166 = vmatmul.msk.f32.gmra.mxu1 %vm394_vm0, %v457_v29 }
 0x128   : > { %1167 = vmatmul.msk.f32.gmra.mxu1 %vm394_vm0, %v458_v30 }
 0x130   : > { %1168 = vmatmul.msk.f32.gmra.mxu1 %vm394_vm0, %v459_v31 }
 0x138   : > { %1169 = vmatmul.msk.f32.gmra.mxu1 %vm394_vm0, %v460_v32  ;;  %v522_v32 = vpop.permute.xlu0 %521 }
 0x155   : > { %v1727_v36 = vpop.f32.mrf.mxu0  ;;  %v1729_v37 = vpop.f32.mrf.mxu1 }
 0x15c   : > { %v1731_v40 = vpop.f32.mrf.mxu3  ;;  %v1741_v60 = vpop.f32.mrf.mxu2 }
 0x15d   : > { %v1733_v41 = vpop.f32.mrf.mxu0  ;;  %v1735_v42 = vpop.f32.mrf.mxu1 }
 0x164   : > { %v855_v46 = vpop.f32.mrf.mxu3  ;;  %v1747_v3 = vpop.f32.mrf.mxu2 }
 0x165   : > { %v807_v47 = vpop.f32.mrf.mxu1  ;;  %v1737_v48 = vpop.f32.mrf.mxu0 }
 0x16c   : > { %v858_v51 = vpop.f32.mrf.mxu3  ;;  %v846_v10 = vpop.f32.mrf.mxu2 }
 0x16d   : > { %v810_v53 = vpop.f32.mrf.mxu1  ;;  %v1739_v54 = vpop.f32.mrf.mxu0  ;;  %v859_v28 = vadd.f32 %v858_v51, %v642_v55  ;;  %v805_v51 = vadd.f32 %v1735_v42, %v552_v52  ;;  %v844_v42 = vadd.f32 %v1747_v3, %v617_v9 }
 0x16e   : > { %v811_v30 = vadd.f32 %v810_v53, %v562_v49 }
 0x170   : > { %v884_v55 = vmax.f32 %v811_v30, 0.0 }
 0x174   : > { %v861_v56 = vpop.f32.mrf.mxu3 }
 0x175   : > { %v813_v58 = vpop.f32.mrf.mxu1  ;;  %v1743_v61 = vpop.f32.mrf.mxu0  ;;  %v862_v23 = vadd.f32 %v861_v56, %v647_v45  ;;  %v900_v45 = vmax.f32 %v859_v28, 0.0 }
 0x176   : > { %v814_v25 = vadd.f32 %v813_v58, %v567_v39  ;;  %v853_v39 = vadd.f32 %v1731_v40, %v632_v59  ;;  %v847_v58 = vadd.f32 %v846_v10, %v622_v8  ;;  %v607_v59 = vpop.permute.xlu1 %606  ;;  %v790_v3 = vadd.f32 %v1743_v61, %v527_v27 }
 0x17c   : > { %v864_v62 = vpop.f32.mrf.mxu3 }
 0x17d   : > { %v816_v0 = vpop.f32.mrf.mxu1  ;;  %v1749_v5 = vpop.f32.mrf.mxu0  ;;  %v865_v17 = vadd.f32 %v864_v62, %v652_v44  ;;  %v885_v44 = vmax.f32 %v814_v25, 0.0  ;;  %v882_v62 = vmax.f32 %v805_v51, 0.0 }
 0x17e   : > { %v817_v20 = vadd.f32 %v816_v0, %v572_v38  ;;  %v808_v38 = vadd.f32 %v807_v47, %v557_v50  ;;  %v612_v47 = vpop.permute.xlu2 %611  ;;  %v898_v50 = vmax.f32 %v853_v39, 0.0  ;;  %v793_v8 = vadd.f32 %v1749_v5, %v532_v22  ;;  %v910_v39 = vld [vmem:[%s1854_s5 + $0x28] sm:$0xff] }
 0x17f   : > { %v902_v29 = vmax.f32 %v865_v17, 0.0  ;;  %v877_v5 = vmax.f32 %v790_v3, 0.0 }
 0x180   : > { %v886_v31 = vmax.f32 %v817_v20, 0.0 }
 0x184   : > { %v867_v4 = vpop.f32.mrf.mxu3 }
 0x185   : > { %v819_v6 = vpop.f32.mrf.mxu1  ;;  %v868_v12 = vadd.f32 %v867_v4, %v657_v43  ;;  %v795_v18 = vpop.f32.mrf.mxu0 }
 0x186   : > { %v820_v15 = vadd.f32 %v819_v6, %v577_v35  ;;  %v849_v43 = vpop.f32.mrf.mxu2  ;;  %v796_v6 = vadd.f32 %v795_v18, %v1745_v2  ;;  %v787_v2 = vadd.f32 %v1739_v54, %v522_v32 }
 0x187   : > { %v903_v24 = vmax.f32 %v868_v12, 0.0  ;;  %v850_v53 = vadd.f32 %v849_v43, %v627_v7  ;;  %v896_v7 = vmax.f32 %v847_v58, 0.0  ;;  %v878_v12 = vmax.f32 %v793_v8, 0.0  ;;  %v906_v43 = vld [vmem:[%s1854_s5 + $0x8] sm:$0xff] }
 0x188   : > { %v887_v26 = vmax.f32 %v820_v15, 0.0  ;;  %v879_v9 = vmax.f32 %v796_v6, 0.0  ;;  %v512_v15 = vpop.permute.xlu1 %511  ;;  %v876_v17 = vmax.f32 %v787_v2, 0.0 }
 0x189   : > { %v897_v52 = vmax.f32 %v850_v53, 0.0 }
 0x18c   : > { %v870_v11 = vpop.f32.mrf.mxu3 }
 0x18d   : > { %v871_v13 = vadd.f32 %v870_v11, %v662_v34  ;;  %v822_v14 = vpop.f32.mrf.mxu1  ;;  %v901_v34 = vmax.f32 %v862_v23, 0.0  ;;  %v798_v56 = vpop.f32.mrf.mxu0 }
 0x18e   : > { %v823_v16 = vadd.f32 %v822_v14, %v582_v33  ;;  %v856_v33 = vadd.f32 %v855_v46, %v637_v57  ;;  %v802_v46 = vadd.f32 %v1729_v37, %v547_v63  ;;  %v883_v57 = vmax.f32 %v808_v38, 0.0  ;;  %v602_v37 = vpop.permute.xlu0 %601 }
 0x18f   : > { %v904_v19 = vmax.f32 %v871_v13, 0.0  ;;  %v799_v40 = vadd.f32 %v798_v56, %v542_v1  ;;  %v841_v63 = vadd.f32 %v1741_v60, %v612_v47  ;;  %v895_v1 = vmax.f32 %v844_v42, 0.0  ;;  %v517_v13 = vpop.permute.xlu2 %516 }
 0x190   : > { %v888_v21 = vmax.f32 %v823_v16, 0.0  ;;  %v899_v49 = vmax.f32 %v856_v33, 0.0  ;;  %v881_v4 = vmax.f32 %v802_v46, 0.0  ;;  %v784_v14 = vadd.f32 %v1737_v48, %v517_v13  ;;  %v905_v48 = vld [vmem:[%s1854_s5] sm:$0xff]  ;;  %v592_v27 = vpop.permute.xlu1 %591 }
 0x191   : > { %966 = vmatpush.msrb.mxu3 %v904_v19  ;;  %v880_v10 = vmax.f32 %v799_v40, 0.0  ;;  %v894_v11 = vmax.f32 %v841_v63, 0.0  ;;  %v781_v16 = vadd.f32 %v1733_v41, %v512_v15 }
 0x192   : > { %937 = vmatpush.msrb.mxu2 %v888_v21  ;;  %v875_v19 = vmax.f32 %v784_v14, 0.0 }
 0x193   : > { %967 = vmatpush.msrb.mxu3 %v903_v24  ;;  %v874_v54 = vmax.f32 %v781_v16, 0.0 }
 0x194   : > { %938 = vmatpush.msrb.mxu2 %v887_v26 }
 0x195   : > { %968 = vmatpush.msrb.mxu3 %v902_v29  ;;  %v1751_v35 = vpop.f32.mrf.mxu1 }
 0x196   : > { %939 = vmatpush.msrb.mxu2 %v886_v31  ;;  %v507_v61 = vpop.permute.xlu0 %506 }
 0x197   : > { %969 = vmatpush.msrb.mxu3 %v901_v34  ;;  %v778_v18 = vadd.f32 %v1727_v36, %v507_v61  ;;  %v597_v22 = vpop.permute.xlu2 %596  ;;  %v907_v36 = vld [vmem:[%s1854_s5 + $0x10] sm:$0xff]  ;;  %v909_v34 = vld [vmem:[%s1854_s5 + $0x20] sm:$0xff] }
 0x198   : > { %940 = vmatpush.msrb.mxu2 %v885_v44  ;;  %v908_v44 = vld [vmem:[%s1854_s5 + $0x18] sm:$0xff] }
 0x199   : > { %970 = vmatpush.msrb.mxu3 %v900_v45  ;;  %v873_v21 = vmax.f32 %v778_v18, 0.0  ;;  %v912_v45 = vld [vmem:[%s1854_s5 + $0x38] sm:$0xff] }
 0x19a   : > { %941 = vmatpush.msrb.mxu2 %v884_v55 }
 0x19b   : > { %971 = vmatpush.msrb.mxu3 %v899_v49 }
 0x19c   : > { %942 = vmatpush.msrb.mxu2 %v883_v57 }
 0x19d   : > { %972 = vmatpush.msrb.mxu3 %v898_v50  ;;  %v828_v0 = vpop.f32.mrf.mxu1 }
 0x19e   : > { %943 = vmatpush.msrb.mxu2 %v882_v62  ;;  %v829_v28 = vadd.f32 %v828_v0, %v592_v27 }
 0x19f   : > { %973 = vmatpush.msrb.mxu3 %v897_v52  ;;  %v587_v30 = vpop.permute.xlu2 %586 }
 0x1a0   : > { %944 = vmatpush.msrb.mxu2 %v881_v4  ;;  %v826_v31 = vadd.f32 %v1751_v35, %v587_v30  ;;  %v890_v33 = vmax.f32 %v829_v28, 0.0  ;;  %v911_v35 = vld [vmem:[%s1854_s5 + $0x30] sm:$0xff] }
 0x1a1   : > { %974 = vmatpush.msrb.mxu3 %v896_v7 }
 0x1a2   : > { %945 = vmatpush.msrb.mxu2 %v880_v10  ;;  %v889_v38 = vmax.f32 %v826_v31, 0.0 }
 0x1a3   : > { %975 = vmatpush.msrb.mxu3 %v895_v1 }
 0x1a4   : > { %946 = vmatpush.msrb.mxu2 %v879_v9 }
 0x1a5   : > { %976 = vmatpush.msrb.mxu3 %v894_v11  ;;  %v831_v60 = vpop.f32.mrf.mxu1 }
 0x1a6   : > { %947 = vmatpush.msrb.mxu2 %v878_v12  ;;  %v832_v25 = vadd.f32 %v831_v60, %v597_v22 }
 0x1a8   : > { %948 = vmatpush.msrb.mxu2 %v877_v5  ;;  %v891_v32 = vmax.f32 %v832_v25, 0.0 }
 0x1aa   : > { %949 = vmatpush.msrb.mxu2 %v876_v17 }
 0x1ac   : > { %950 = vmatpush.msrb.mxu2 %v875_v19 }
 0x1ad   : > { %v834_v20 = vpop.f32.mrf.mxu1 }
 0x1ae   : > { %951 = vmatpush.msrb.mxu2 %v874_v54  ;;  %v835_v23 = vadd.f32 %v834_v20, %v602_v37 }
 0x1b0   : > { %952 = vmatpush.msrb.mxu2 %v873_v21  ;;  %v892_v29 = vmax.f32 %v835_v23, 0.0 }
 0x1b1   : > { %953 = vmatmul.f32.vlgmr.msrb.gmra.mxu2 %v905_v48 }
 0x1b5   : > { %v837_v41 = vpop.f32.mrf.mxu1 }
 0x1b6   : > { %v838_v24 = vadd.f32 %v837_v41, %v607_v59 }
 0x1b8   : > { %v893_v26 = vmax.f32 %v838_v24, 0.0 }
 0x1b9   : > { %956 = vmatmul.f32.gmra.mxu2 %v907_v36 }
 0x1ba   : > { %977 = vmatpush.msrb.mxu3 %v893_v26 }
 0x1bc   : > { %978 = vmatpush.msrb.mxu3 %v892_v29 }
 0x1be   : > { %979 = vmatpush.msrb.mxu3 %v891_v32 }
 0x1c0   : > { %980 = vmatpush.msrb.mxu3 %v890_v33 }
 0x1c1   : > { %959 = vmatmul.f32.gmra.mxu2 %v909_v34 }
 0x1c2   : > { %981 = vmatpush.msrb.mxu3 %v889_v38 }
 0x1c3   : > { %982 = vmatmul.f32.vlgmr.msrb.gmra.mxu3 %v906_v43 }
 0x1c9   : > { %962 = vmatmul.f32.gmra.mxu2 %v911_v35 }
 0x1cb   : > { %985 = vmatmul.f32.gmra.mxu3 %v908_v44 }
 0x1d3   : > { %988 = vmatmul.f32.gmra.mxu3 %v910_v39 }
 0x1db   : > { %991 = vmatmul.f32.gmra.mxu3 %v912_v45 }
 0x1dc   : > { %1277 = shalt.err (!%p1274_p5)
}
 0x1dd   : > { %s1347_s17 = smov 128   ;;  %s1348_s19 = smov 512   ;;  %v920_v55 = vpop.permute.xlu0 %919  ;;  %v925_v57 = vpop.permute.xlu1 %924 }
 0x1de   : > { %s1349_s20 = smov 8   ;;  %s361_s0 = scalar_lea.vmem [#allocation5], %s1459_s13  ;;  %v930_v40 = vpop.permute.xlu2 %929 }
 0x1df   : > { %1199 = dma.vmem_to_hbm [thread:$0]  (%p1433_p6), %s1017_s10, 512, %s1019_s21, %s1000_s23, %s1347_s17, %s1348_s19, %s1349_s20  }
 0x1e0   : > { %s1031_s21 = scalar_lea.hbm %s1857_s8, %s1793_s18  ;;  %s1032_s13 = sshll.u32 %s361_s0, 4  ;;  %s1033_s13 = int_to_ptr.vmem [resolvable:$true] %s1032_s13 }
 0x1e1   : > { %s1034_s23 = sshll.u32 %s1031_s21, 4  ;;  %s1005_s24 = scalar_lea.sflag [#allocation6], %s1456_s12  ;;  %s1035_s23 = int_to_ptr.hbm [resolvable:$true] %s1034_s23 }
 0x1e2   : > { %s1292_s22 = sshra.s32 %s1035_s23, 4  ;;  %s1298_s26 = scalar_lea.hbm %s1857_s8, 128  ;;  %s1293_s22 = int_to_ptr.hbm [resolvable:$true] %s1292_s22 }
 0x1e3   : > { %s1294_s25 = scalar_lea.hbm %s1293_s22, 32  ;;  %p1299_p11 = scmp.lt.s32.totalorder %s1293_s22, %s1857_s8 }
 0x1e4   : > { %p1295_p7 = scmp.ne.s32.totalorder %s1293_s22, %s1294_s25  ;;  %p1300_p12 = scmp.lt.s32.totalorder %s1298_s26, %s1294_s25 }
 0x1e5   : > { %v935_v4 = vpop.permute.xlu0 %934 }
 0x1e6   : > { %p1296_p9 = pnand %p1295_p7, %p1433_p6  ;;  %p1301_p13 = por %p1300_p12, %p1299_p11 }
 0x1e8   : > { %p1297_p10 = pneg %p1296_p9 }
 0x1ea   : > { %p1302_p0 = pnand %p1301_p13, %p1297_p10 }
 0x234   : > { %v954_v51 = vpop.f32.mrf.mxu2 }
 0x235   : > { %v955_v49 = vadd.f32 %v954_v51, %v920_v55 }
 0x23c   : > { %v957_v53 = vpop.f32.mrf.mxu2 }
 0x23d   : > { %v958_v47 = vadd.f32 %v957_v53, %v925_v57 }
 0x244   : > { %v960_v62 = vpop.f32.mrf.mxu2 }
 0x245   : > { %v961_v59 = vadd.f32 %v960_v62, %v930_v40 }
 0x246   : > { %v983_v56 = vpop.f32.mrf.mxu3 }
 0x247   : > { %v984_v46 = vadd.f32 %v983_v56, %v955_v49 }
 0x249   : > { %995 = vst [vmem:[%s361_s0] sm:$0xff] %v984_v46 }
 0x24c   : > { %v963_v0 = vpop.f32.mrf.mxu2 }
 0x24d   : > { %v964_v6 = vadd.f32 %v963_v0, %v935_v4 }
 0x24e   : > { %v986_v50 = vpop.f32.mrf.mxu3 }
 0x24f   : > { %v987_v58 = vadd.f32 %v986_v50, %v958_v47 }
 0x251   : > { %996 = vst [vmem:[%s361_s0 + $0x8] sm:$0xff] %v987_v58 }
 0x256   : > { %v989_v42 = vpop.f32.mrf.mxu3 }
 0x257   : > { %v990_v52 = vadd.f32 %v989_v42, %v961_v59 }
 0x259   : > { %997 = vst [vmem:[%s361_s0 + $0x10] sm:$0xff] %v990_v52 }
 0x25e   : > { %v992_v37 = vpop.f32.mrf.mxu3 }
 0x25f   : > { %v993_v63 = vadd.f32 %v992_v37, %v964_v6 }
 0x261   : > { %998 = vst [vmem:[%s361_s0 + $0x18] sm:$0xff] %v993_v63 }
 0x262   : > { %1305 = shalt.err (!%p1302_p0)
}
 0x263   : > { %1200 = dma.vmem_to_hbm [thread:$0]  (%p1433_p6), %s1033_s13, 512, %s1035_s23, %s1005_s24, %s1347_s17, %s1348_s19, %s1349_s20  }
 0x264 PF: > { %p1210_p1 = scmp.ge.s32.totalorder %s1344_s30, 2  ;;  %s1049_s12 = sand.u32 1, %s1332_s27  }
 0x265   : > { %s1050_s0 = scalar_lea.sflag [#allocation4], %s1049_s12 }
 0x266   : > { %p1204_p2 = pnand %p1210_p1, %p1437_p8 }
 0x268   : > { %p1205_p3 = pneg %p1204_p2 }
 0x26a   : > { %1323 = dma.done.wait (%p1205_p3), %s1050_s0, 512  }
 0x26b   : > { %1325 = vsyncadd (%p1205_p3), %s1050_s0, 4294966784  ;;  %s1060_s21 = scalar_lea.sflag [#allocation6], %s1049_s12 }
 0x26c   : > { %1327 = dma.done.wait (%p1205_p3), %s1060_s21, 512  }
 0x26d   : > { %1329 = vsyncadd (%p1205_p3), %s1060_s21, 4294966784  ;;  %p22_p6 = scmp.ge.s32.totalorder %s1418_s11, 6   ;;  %s1864_s27 = smov %s1336_s28 }
 0x26e   : > { %s1865_s28 = smov %s1340_s29  ;;  %s1866_s29 = smov %s1431_s14 }
 0x26f   : > { %s1867_s30 = smov %s1418_s11  ;;  %24 = sbr.rel (!%p22_p6) target bundleno = 8 (0x8), region = 143 }
 0x274   :  { %1066 = vsyncpa [#allocation4], 1 }
 0x275   :  { %1068 = vsyncpa [#allocation4 + $0x1], 1 }
 0x276   :  { %1069 = vsyncpa [#allocation6], 1 }
 0x277   :  { %1071 = vsyncpa [#allocation6 + $0x1], 1 }

</bundles_post_ra>
